<compile_context>
chip_gen: v7x
topology: tpu7x:2x2x1
jax: 0.10.0
libtpu: 0.0.40
codegen_flags: <defaults>
</compile_context>

<pallas_src>
import functools
import math

import jax
import jax.numpy as jnp
from jax.experimental import pallas as pl
from jax.experimental.pallas import tpu as pltpu


def qnet_kernel(x_ref, w1_ref, w2_ref, b2_ref, wh_ref, bh_ref, out_ref, *, sub_b):
    # x_ref: (in_pad, TILE_B) with a constant-1 row (b1 folded into W1).
    w1 = w1_ref[...]                       # (hidden, in_pad)   [b1 in last used col]
    w2 = w2_ref[...]                       # (hidden, hidden)
    b2 = b2_ref[...]                       # (hidden, 1) f32
    wh = wh_ref[...]                       # (out_dim, hidden)  [dueling combine folded]
    bh = bh_ref[...]                       # (out_dim, 1) f32

    n_sub = out_ref.shape[-1] // sub_b     # static

    def compute(x):
        h = jnp.dot(w1, x, preferred_element_type=jnp.float32)
        h = jnp.maximum(h, 0.0).astype(w2.dtype)
        h = jnp.dot(w2, h, preferred_element_type=jnp.float32) + b2
        h = jnp.maximum(h, 0.0).astype(wh.dtype)
        return jnp.dot(wh, h, preferred_element_type=jnp.float32) + bh

    if n_sub == 1:
        out_ref[...] = compute(x_ref[...]).astype(out_ref.dtype)
    else:
        def body(s, carry):
            j = pl.multiple_of(s * sub_b, sub_b)
            xs = x_ref[:, pl.ds(j, sub_b)]
            out_ref[:, pl.ds(j, sub_b)] = compute(xs).astype(out_ref.dtype)
            return carry

        jax.lax.fori_loop(0, n_sub, body, 0, unroll=True)


def qnet_forward(x, params, *, tile_b_max=8192, use_bf16=False):
    """x: (B, input_dim) float32.  params: PyTorch-layout parameter dict.

    Returns (B, output_dim) float32.
    """
    B, input_dim = x.shape
    hidden = params["w1"].shape[0]
    out_dim = params["wA_mu"].shape[0]

    # ---- batch-independent precompute (plain XLA, tiny) ----
    # NoisyLinear effective weights (training mode).
    wV = params["wV_mu"] + params["wV_sigma"] * params["wV_eps"]   # (1, hidden)
    bV = params["bV_mu"] + params["bV_sigma"] * params["bV_eps"]   # (1,)
    wA = params["wA_mu"] + params["wA_sigma"] * params["wA_eps"]   # (out_dim, hidden)
    bA = params["bA_mu"] + params["bA_sigma"] * params["bA_eps"]   # (out_dim,)
    # Dueling combine folded into the head (affine in h => exact).
    w_head = wV + wA - jnp.mean(wA, axis=0, keepdims=True)          # (out_dim, hidden)
    b_head = (bV + bA - jnp.mean(bA))[:, None]                      # (out_dim, 1)

    # Fold b1 into W1 via a constant-1 input row; pad contraction dim to mult of 8.
    in_aug = input_dim + 1
    in_pad = ((in_aug + 7) // 8) * 8
    w1_aug = jnp.concatenate(
        [params["w1"], params["b1"][:, None],
         jnp.zeros((hidden, in_pad - in_aug), jnp.float32)], axis=1)  # (hidden, in_pad)
    b2 = params["b2"][:, None]                                       # (hidden, 1)

    # ---- batch tile selection: minimize padding, keep >=2 steps for v7x ----
    lane = 128
    n_tiles = max(1, -(-B // tile_b_max))
    if B >= 2 * lane:
        n_tiles = max(n_tiles, 2)            # both v7x TensorCores get work
    tile_b = max(lane, ((-(-B // n_tiles) + lane - 1) // lane) * lane)
    n_tiles = -(-B // tile_b)
    b_pad = n_tiles * tile_b
    sub_b = next(s for s in (512, 384, 256, 128) if tile_b % s == 0)

    # ---- layout plumbing: (features, batch) with ones row, padded batch ----
    x_t = jnp.concatenate([x.T, jnp.ones((1, B), x.dtype)], axis=0)  # (in_aug, B)
    x_t = jnp.pad(x_t, ((0, in_pad - in_aug), (0, b_pad - B)))       # (in_pad, b_pad)

    cdt = jnp.bfloat16 if use_bf16 else jnp.float32
    x_t = x_t.astype(cdt)
    w1_aug = w1_aug.astype(cdt)
    w2 = params["w2"].astype(cdt)
    w_head = w_head.astype(cdt)

    kernel = functools.partial(qnet_kernel, sub_b=sub_b)

    out_t = pl.pallas_call(
        kernel,
        out_shape=jax.ShapeDtypeStruct((out_dim, b_pad), jnp.float32),
        grid_spec=pltpu.PrefetchScalarGridSpec(
            num_scalar_prefetch=0,
            grid=(n_tiles,),
            in_specs=[
                pl.BlockSpec((in_pad, tile_b), lambda i: (0, i)),   # x (batch on lanes)
                pl.BlockSpec((hidden, in_pad), lambda i: (0, 0)),   # W1 (+ b1 column)
                pl.BlockSpec((hidden, hidden), lambda i: (0, 0)),   # W2
                pl.BlockSpec((hidden, 1), lambda i: (0, 0)),        # b2
                pl.BlockSpec((out_dim, hidden), lambda i: (0, 0)),  # fused dueling head W
                pl.BlockSpec((out_dim, 1), lambda i: (0, 0)),       # fused dueling head b
            ],
            out_specs=pl.BlockSpec((out_dim, tile_b), lambda i: (0, i)),
        ),
        compiler_params=pltpu.CompilerParams(
            dimension_semantics=("parallel",),
            vmem_limit_bytes=32 * 1024 * 1024,
        ),
    )(x_t, w1_aug, w2, b2, w_head, b_head)

    return out_t[:, :B].T                                            # (B, out_dim)


def _scale_noise(key, size):
    # torch: x = randn(size); x.sign() * sqrt(|x|)
    x = jax.random.normal(key, (size,), dtype=jnp.float32)
    return jnp.sign(x) * jnp.sqrt(jnp.abs(x))


def init_qnet_params(key, input_dim=7, hidden=64, output_dim=3, sigma_init=0.017):
    """Synthetic init mirroring the PyTorch module exactly in shape/layout."""
    ks = jax.random.split(key, 12)

    def uniform(k, shape, bound):
        return jax.random.uniform(k, shape, jnp.float32, -bound, bound)

    p = {}
    bnd1 = 1.0 / math.sqrt(input_dim)
    p["w1"] = uniform(ks[0], (hidden, input_dim), bnd1)
    p["b1"] = uniform(ks[1], (hidden,), bnd1)
    bnd2 = 1.0 / math.sqrt(hidden)
    p["w2"] = uniform(ks[2], (hidden, hidden), bnd2)
    p["b2"] = uniform(ks[3], (hidden,), bnd2)

    mu_r = 1.0 / math.sqrt(hidden)
    # fc_V : NoisyLinear(hidden, 1)
    p["wV_mu"] = uniform(ks[4], (1, hidden), mu_r)
    p["bV_mu"] = uniform(ks[5], (1,), mu_r)
    p["wV_sigma"] = jnp.full((1, hidden), sigma_init, jnp.float32)
    p["bV_sigma"] = jnp.full((1,), sigma_init, jnp.float32)
    epsV_in = _scale_noise(ks[6], hidden)
    epsV_out = _scale_noise(ks[7], 1)
    p["wV_eps"] = jnp.outer(epsV_out, epsV_in)
    p["bV_eps"] = epsV_out
    # fc_A : NoisyLinear(hidden, output_dim)
    p["wA_mu"] = uniform(ks[8], (output_dim, hidden), mu_r)
    p["bA_mu"] = uniform(ks[9], (output_dim,), mu_r)
    p["wA_sigma"] = jnp.full((output_dim, hidden), sigma_init, jnp.float32)
    p["bA_sigma"] = jnp.full((output_dim,), sigma_init, jnp.float32)
    epsA_in = _scale_noise(ks[10], hidden)
    epsA_out = _scale_noise(ks[11], output_dim)
    p["wA_eps"] = jnp.outer(epsA_out, epsA_in)
    p["bA_eps"] = epsA_out
    return p


def qnet_reference(x, p):
    """Pure-JAX reference (PyTorch layout, unfolded) for correctness check."""
    h = jnp.maximum(x @ p["w1"].T + p["b1"], 0.0)
    h = jnp.maximum(h @ p["w2"].T + p["b2"], 0.0)
    wV = p["wV_mu"] + p["wV_sigma"] * p["wV_eps"]
    bV = p["bV_mu"] + p["bV_sigma"] * p["bV_eps"]
    wA = p["wA_mu"] + p["wA_sigma"] * p["wA_eps"]
    bA = p["bA_mu"] + p["bA_sigma"] * p["bA_eps"]
    V = h @ wV.T + bV
    A = h @ wA.T + bA
    return V + (A - A.mean(axis=1, keepdims=True))


if __name__ == "__main__":
    key = jax.random.PRNGKey(0)
    k_param, k_x1, k_x2 = jax.random.split(key, 3)

    INPUT_DIM, OUTPUT_DIM = 7, 3
    params = init_qnet_params(k_param, input_dim=INPUT_DIM, output_dim=OUTPUT_DIM)

    # Small smoke test (single tile, n_sub == 1 path).
    B1 = 8
    x1 = jax.random.normal(k_x1, (B1, INPUT_DIM), dtype=jnp.float32)
    out1 = jax.block_until_ready(qnet_forward(x1, params))
    ref1 = qnet_reference(x1, params)
    assert out1.shape == (B1, OUTPUT_DIM), out1.shape
    assert jnp.allclose(out1, ref1, atol=2e-5, rtol=1e-4), (
        f"f32 small-batch max abs err {jnp.max(jnp.abs(out1 - ref1))}"
    )

    # Multi-tile + padded-batch + sub-block loop path (2 grid steps, n_sub > 1).
    B2 = 1300
    x2 = jax.random.normal(k_x2, (B2, INPUT_DIM), dtype=jnp.float32)
    out2 = jax.block_until_ready(qnet_forward(x2, params))
    ref2 = qnet_reference(x2, params)
    assert out2.shape == (B2, OUTPUT_DIM), out2.shape
    assert jnp.allclose(out2, ref2, atol=2e-5, rtol=1e-4), (
        f"f32 multi-tile max abs err {jnp.max(jnp.abs(out2 - ref2))}"
    )

    # bf16-operand path (single-pass MXU on v6e/v7x), f32 accumulation.
    out2_bf16 = jax.block_until_ready(qnet_forward(x2, params, use_bf16=True))
    assert jnp.allclose(out2_bf16, ref2, atol=5e-2, rtol=5e-2), (
        f"bf16 max abs err {jnp.max(jnp.abs(out2_bf16 - ref2))}"
    )

    print("KERNEL_OK")
</pallas_src>

<mosaic_0001>
module attributes {stable_mosaic.version = 11 : i64} {
  func.func @qnet_kernel(%arg0: i32, %arg1: memref<8x128xf32, #tpu.memory_space<vmem>>, %arg2: memref<64x8xf32, #tpu.memory_space<vmem>>, %arg3: memref<64x64xf32, #tpu.memory_space<vmem>>, %arg4: memref<64x1xf32, #tpu.memory_space<vmem>>, %arg5: memref<3x64xf32, #tpu.memory_space<vmem>>, %arg6: memref<3x1xf32, #tpu.memory_space<vmem>>, %arg7: memref<3x128xf32, #tpu.memory_space<vmem>>) attributes {dimension_semantics = [#tpu.dimension_semantics<parallel>], iteration_bounds = array<i64: 1>, scalar_prefetch = 0 : i64, scratch_operands = 0 : i64, tpu.core_type = #tpu.core_type<tc>, window_params = [{transform_indices = @transform_0, window_bounds = array<i64: 8, 128>}, {pipeline_mode = #tpu.pipeline_mode<synchronous>, transform_indices = @transform_1, window_bounds = array<i64: 64, 8>}, {pipeline_mode = #tpu.pipeline_mode<synchronous>, transform_indices = @transform_2, window_bounds = array<i64: 64, 64>}, {pipeline_mode = #tpu.pipeline_mode<synchronous>, transform_indices = @transform_3, window_bounds = array<i64: 64, 1>}, {pipeline_mode = #tpu.pipeline_mode<synchronous>, transform_indices = @transform_4, window_bounds = array<i64: 3, 64>}, {pipeline_mode = #tpu.pipeline_mode<synchronous>, transform_indices = @transform_5, window_bounds = array<i64: 3, 1>}, {transform_indices = @transform_6, window_bounds = array<i64: 3, 128>}]} {
    %c0 = arith.constant 0 : index
    %c0_0 = arith.constant 0 : index
    %0 = vector.load %arg2[%c0, %c0_0] : memref<64x8xf32, #tpu.memory_space<vmem>>, vector<64x8xf32>
    %c0_1 = arith.constant 0 : index
    %c0_2 = arith.constant 0 : index
    %1 = vector.load %arg3[%c0_1, %c0_2] : memref<64x64xf32, #tpu.memory_space<vmem>>, vector<64x64xf32>
    %c0_3 = arith.constant 0 : index
    %c0_4 = arith.constant 0 : index
    %2 = vector.load %arg4[%c0_3, %c0_4] : memref<64x1xf32, #tpu.memory_space<vmem>>, vector<64x1xf32>
    %c0_5 = arith.constant 0 : index
    %c0_6 = arith.constant 0 : index
    %3 = vector.load %arg5[%c0_5, %c0_6] : memref<3x64xf32, #tpu.memory_space<vmem>>, vector<3x64xf32>
    %c0_7 = arith.constant 0 : index
    %c0_8 = arith.constant 0 : index
    %4 = vector.load %arg6[%c0_7, %c0_8] : memref<3x1xf32, #tpu.memory_space<vmem>>, vector<3x1xf32>
    %c0_9 = arith.constant 0 : index
    %c0_10 = arith.constant 0 : index
    %5 = vector.load %arg1[%c0_9, %c0_10] : memref<8x128xf32, #tpu.memory_space<vmem>>, vector<8x128xf32>
    %cst = arith.constant dense<0.000000e+00> : vector<64x128xf32>
    %6 = tpu.matmul %0, %5, %cst {dimension_numbers = #tpu.dot_dimension_numbers<[1], [0], [0], [1], [0, 0, 1, 1], [], []>} : vector<64x8xf32>, vector<8x128xf32>, vector<64x128xf32> -> vector<64x128xf32>
    %cst_11 = arith.constant 0.000000e+00 : f32
    %7 = vector.broadcast %cst_11 : f32 to vector<64x128xf32>
    %8 = arith.maximumf %6, %7 : vector<64x128xf32>
    %cst_12 = arith.constant dense<0.000000e+00> : vector<64x128xf32>
    %9 = tpu.matmul %1, %8, %cst_12 {dimension_numbers = #tpu.dot_dimension_numbers<[1], [0], [0], [1], [0, 0, 1, 1], [], []>} : vector<64x64xf32>, vector<64x128xf32>, vector<64x128xf32> -> vector<64x128xf32>
    %10 = vector.broadcast %2 : vector<64x1xf32> to vector<64x128xf32>
    %11 = arith.addf %9, %10 : vector<64x128xf32>
    %cst_13 = arith.constant 0.000000e+00 : f32
    %12 = vector.broadcast %cst_13 : f32 to vector<64x128xf32>
    %13 = arith.maximumf %11, %12 : vector<64x128xf32>
    %cst_14 = arith.constant dense<0.000000e+00> : vector<3x128xf32>
    %14 = tpu.matmul %3, %13, %cst_14 {dimension_numbers = #tpu.dot_dimension_numbers<[1], [0], [0], [1], [0, 0, 1, 1], [], []>} : vector<3x64xf32>, vector<64x128xf32>, vector<3x128xf32> -> vector<3x128xf32>
    %15 = vector.broadcast %4 : vector<3x1xf32> to vector<3x128xf32>
    %16 = arith.addf %14, %15 : vector<3x128xf32>
    %c0_15 = arith.constant 0 : index
    %c0_16 = arith.constant 0 : index
    %17 = vector.load %arg7[%c0_15, %c0_16] : memref<3x128xf32, #tpu.memory_space<vmem>>, vector<3x128xf32>
    tpu.vector_store %arg7[%c0_15, %c0_16], %16 {strides = array<i32>} : memref<3x128xf32, #tpu.memory_space<vmem>>, vector<3x128xf32>,
    return
  }
  func.func @transform_0(%arg0: i32) -> (i32, i32) {
    %c0_i32 = arith.constant 0 : i32
    %c0_i32_0 = arith.constant 0 : i32
    return %c0_i32, %arg0 : i32, i32
  }
  func.func @transform_1(%arg0: i32) -> (i32, i32) {
    %c0_i32 = arith.constant 0 : i32
    %c0_i32_0 = arith.constant 0 : i32
    %c0_i32_1 = arith.constant 0 : i32
    return %c0_i32, %c0_i32_0 : i32, i32
  }
  func.func @transform_2(%arg0: i32) -> (i32, i32) {
    %c0_i32 = arith.constant 0 : i32
    %c0_i32_0 = arith.constant 0 : i32
    %c0_i32_1 = arith.constant 0 : i32
    return %c0_i32, %c0_i32_0 : i32, i32
  }
  func.func @transform_3(%arg0: i32) -> (i32, i32) {
    %c0_i32 = arith.constant 0 : i32
    %c0_i32_0 = arith.constant 0 : i32
    %c0_i32_1 = arith.constant 0 : i32
    return %c0_i32, %c0_i32_0 : i32, i32
  }
  func.func @transform_4(%arg0: i32) -> (i32, i32) {
    %c0_i32 = arith.constant 0 : i32
    %c0_i32_0 = arith.constant 0 : i32
    %c0_i32_1 = arith.constant 0 : i32
    return %c0_i32, %c0_i32_0 : i32, i32
  }
  func.func @transform_5(%arg0: i32) -> (i32, i32) {
    %c0_i32 = arith.constant 0 : i32
    %c0_i32_0 = arith.constant 0 : i32
    %c0_i32_1 = arith.constant 0 : i32
    return %c0_i32, %c0_i32_0 : i32, i32
  }
  func.func @transform_6(%arg0: i32) -> (i32, i32) {
    %c0_i32 = arith.constant 0 : i32
    %c0_i32_0 = arith.constant 0 : i32
    return %c0_i32, %arg0 : i32, i32
  }
}

</mosaic_0001>

<bundles_post_ra>
// kernel: tpu_custom_call.1
= control target key start
LH: loop header
LB: loop body
LE: loop exit
PB: predicated region body
PF: predicated region fallthrough
CT: control target
= control target key end

     0   :  { %vm51_vm0 = vcmask 64512   ;;  %s781_s0 = inlined_call_operand.vmem [shape: f32[8,128], index: 0, kind: input, shape index: {}]   ;;  %s782_s1 = inlined_call_operand.vmem [shape: f32[64,8], index: 1, kind: input, shape index: {}]   ;;  %s783_s2 = inlined_call_operand.vmem [shape: f32[64,64], index: 2, kind: input, shape index: {}]   ;;  %s784_s3 = inlined_call_operand.vmem [shape: f32[64,1], index: 3, kind: input, shape index: {}]   ;;  %s785_s4 = inlined_call_operand.vmem [shape: f32[3,64], index: 4, kind: input, shape index: {}]   ;;  %s786_s5 = inlined_call_operand.vmem [shape: f32[3,1], index: 5, kind: input, shape index: {}]   ;;  %s787_s6 = inlined_call_operand.hbm [shape: f32[3,128], index: 6, kind: output, shape index: {}]  }
   0x1   :  { %v50_v0 = vld [vmem:[%s781_s0] sm:$0xff]  ;;  %v25_v2 = vld [vmem:[%s782_s1 + $0x8] sm:$0xff]  ;;  %v26_v3 = vld [vmem:[%s782_s1 + $0x10] sm:$0xff] }
   0x2   :  { %v24_v1 = vld [vmem:[%s782_s1] sm:$0xff]  ;;  %511 = vmatprep.subr.mxu0 %v50_v0 }
   0x3   :  { %513 = vmatprep.mubr.msk.f32.mxu0 %vm51_vm0, %v24_v1  ;;  %512 = vmatpush3.msra.mxu0 %v50_v0 }
   0x4   :  { %514 = vmatmul.mubr.msk.f32.vlgmr.msra.gmra.mrb[0].mxu0 %vm51_vm0, %v25_v2 }
   0x5   :  { %11 = vsyncpa [#allocation3], 0  ;;  %516 = vmatprep.mubr.msk.f32.mxu0 %vm51_vm0, %v26_v3  ;;  %v27_v4 = vld [vmem:[%s782_s1 + $0x18] sm:$0xff]  ;;  %v28_v5 = vld [vmem:[%s782_s1 + $0x20] sm:$0xff]  ;;  %vm229_vm1 = vcmask 523264   ;;  %v631_v12 = vmov 0  }
   0x6   :  { %v29_v6 = vld [vmem:[%s782_s1 + $0x28] sm:$0xff]  ;;  %v30_v7 = vld [vmem:[%s782_s1 + $0x30] sm:$0xff]  ;;  %v31_v8 = vld [vmem:[%s782_s1 + $0x38] sm:$0xff]  ;;  %605 = vset.pattern.permute.xlu0 %v631_v12  ;;  %606 = vset.pattern.permute.xlu1 %v631_v12  ;;  %v632_v47 = vmov 0.0|0.0   ;;  %vm633_vm2 = vmmov 0   ;;  %v634_v48 = vmov 0.0  }
   0x7   :  { %v32_v9 = vld [vmem:[%s783_s2] sm:$0xff]  ;;  %v42_v11 = vld [vmem:[%s784_s3 + $0x10] sm:$0xff]  ;;  %v41_v13 = vld [vmem:[%s784_s3 + $0x8] sm:$0xff]  ;;  %588 = vmatprep.subr.bf16.mxu0 %v632_v47  ;;  %s635_s20 = smov [#allocation2]  }
   0x8   :  { %517 = vmatmul.mubr.msk.f32.gmra.mrb[2].mxu0 %vm51_vm0, %v27_v4  ;;  %541 = vmatprep.mubr.msk.f32.mxu1 %vm229_vm1, %v32_v9  ;;  %v40_v10 = vld [vmem:[%s784_s3] sm:$0xff]  ;;  %v43_v14 = vld [vmem:[%s784_s3 + $0x18] sm:$0xff]  ;;  %v45_v16 = vld [vmem:[%s784_s3 + $0x28] sm:$0xff]  ;;  %s452_s21 = sshll.u32 %s635_s20, 4  ;;  %s453_s21 = int_to_ptr.vmem [resolvable:$true] %s452_s21 }
   0x9   :  { %519 = vmatprep.mubr.msk.f32.mxu0 %vm51_vm0, %v28_v5  ;;  %191 = vperm.xlu0 %605, %v40_v10   ;;  %v44_v15 = vld [vmem:[%s784_s3 + $0x20] sm:$0xff]  ;;  %v46_v17 = vld [vmem:[%s784_s3 + $0x30] sm:$0xff]  ;;  %v47_v18 = vld [vmem:[%s784_s3 + $0x38] sm:$0xff]  ;;  %s607_s22 = scalar_lea.vmem %s453_s21, 64  ;;  %p612_p1 = scmp.lt.s32.totalorder %s453_s21, %s453_s21 }
   0xa   :  { %201 = vperm.xlu1 %606, %v42_v11   ;;  %v49_v19 = vld [vmem:[%s786_s5] sm:$0x7]  ;;  %v33_v40 = vld [vmem:[%s783_s2 + $0x8] sm:$0xff]  ;;  %v34_v41 = vld [vmem:[%s783_s2 + $0x10] sm:$0xff]  ;;  %p608_p0 = scmp.ne.s32.totalorder %s453_s21, %s607_s22  ;;  %p613_p2 = scmp.lt.s32.totalorder %s607_s22, %s607_s22 }
   0xb   :  { %v35_v42 = vld [vmem:[%s783_s2 + $0x18] sm:$0xff]  ;;  %v36_v43 = vld [vmem:[%s783_s2 + $0x20] sm:$0xff]  ;;  %v37_v44 = vld [vmem:[%s783_s2 + $0x28] sm:$0xff] }
   0xc   :  { %520 = vmatmul.mubr.msk.f32.gmra.mrb[4].mxu0 %vm51_vm0, %v29_v6  ;;  %v38_v45 = vld [vmem:[%s783_s2 + $0x30] sm:$0xff]  ;;  %v39_v46 = vld [vmem:[%s783_s2 + $0x38] sm:$0xff]  ;;  %p614_p3 = por %p613_p2, %p612_p1 }
   0xd   :  { %522 = vmatprep.mubr.msk.f32.mxu0 %vm51_vm0, %v30_v7  ;;  %196 = vperm.xlu0 %605, %v41_v13  }
   0xe   :  { %206 = vperm.xlu1 %606, %v43_v14   ;;  %p615_p4 = pnand %p614_p3, %p608_p0 }
  0x10   :  { %523 = vmatmul.mubr.msk.f32.gmra.mrb[6].mxu0 %vm51_vm0, %v31_v8 }
  0x11   :  { %211 = vperm.xlu0 %605, %v44_v15   ;;  %569 = vmatprep.mubr.msk.f32.mxu0 %vm633_vm2, %v634_v48 }
  0x12   :  { %216 = vperm.xlu1 %606, %v45_v16  }
  0x15   :  { %221 = vperm.xlu0 %605, %v46_v17  }
  0x16   :  { %226 = vperm.xlu1 %606, %v47_v18  }
  0x19   :  { %369 = vperm.xlu0 %605, %v49_v19  }
  0x88   :  { %v192_v49 = vpop.permute.xlu0 %191 }
  0x89   :  { %v202_v50 = vpop.permute.xlu1 %201 }
  0x8c   :  { %v197_v51 = vpop.permute.xlu0 %196 }
  0x8d   :  { %v207_v52 = vpop.permute.xlu1 %206 }
  0x90   :  { %v212_v1 = vpop.permute.xlu0 %211 }
  0x91   :  { %v217_v62 = vpop.permute.xlu1 %216 }
  0x94   :  { %v222_v13 = vpop.permute.xlu0 %221 }
  0x95   :  { %v227_v10 = vpop.permute.xlu1 %226 }
  0xd7   :  { %v515_v20 = vpop.f32.mrb[0].mxu0 }
  0xd8   :  { %v182_v21 = vmax.f32 %v515_v20, 0.0  ;;  %v142_v22 = vpop.f32.mrb[1].mxu0 }
  0xd9   :  { %v181_v23 = vmax.f32 %v142_v22, 0.0  ;;  %v370_v22 = vpop.permute.xlu0 %369 }
  0xdb   :  { %v518_v24 = vpop.f32.mrb[2].mxu0  ;;  %v572_v25 = vpack.c.bf16 %v182_v21, %v181_v23  ;;  %v48_v21 = vld [vmem:[%s785_s4] sm:$0x7] }
  0xdc   :  { %v184_v26 = vmax.f32 %v518_v24, 0.0  ;;  %v152_v27 = vpop.f32.mrb[3].mxu0 }
  0xdd   :  { %v183_v28 = vmax.f32 %v152_v27, 0.0  ;;  %573 = vmatprep.subr.bf16.mxu1 %v572_v25 }
  0xde   :  { %575 = vmatpush3.bf16.msra.mxu1 %v572_v25 }
  0xdf   :  { %v576_v29 = vpack.c.bf16 %v184_v26, %v183_v28  ;;  %v521_v30 = vpop.f32.mrb[4].mxu0 }
  0xe0   :  { %v186_v31 = vmax.f32 %v521_v30, 0.0  ;;  %v162_v32 = vpop.f32.mrb[5].mxu0 }
  0xe1   :  { %v185_v33 = vmax.f32 %v162_v32, 0.0  ;;  %577 = vmatprep.subr.bf16.mxu1 %v576_v29 }
  0xe2   :  { %579 = vmatpush3.bf16.msra.mxu1 %v576_v29 }
  0xe3   :  { %v580_v34 = vpack.c.bf16 %v186_v31, %v185_v33  ;;  %v524_v35 = vpop.f32.mrb[6].mxu0 }
  0xe4   :  { %v188_v36 = vmax.f32 %v524_v35, 0.0  ;;  %v172_v37 = vpop.f32.mrb[7].mxu0 }
  0xe5   :  { %v187_v38 = vmax.f32 %v172_v37, 0.0  ;;  %581 = vmatprep.subr.bf16.mxu1 %v580_v34 }
  0xe6   :  { %583 = vmatpush3.bf16.msra.mxu1 %v580_v34 }
  0xe7   :  { %v584_v39 = vpack.c.bf16 %v188_v36, %v187_v38 }
  0xe9   :  { %585 = vmatprep.subr.bf16.mxu1 %v584_v39 }
  0xea   :  { %587 = vmatpush3.bf16.msra.mxu1 %v584_v39 }
  0xed   :  { %542 = vmatmul.mubr.msk.f32.vlgmr.msra.gmra.mrb[0].mxu1 %vm229_vm1, %v33_v40 }
  0xee   :  { %544 = vmatprep.mubr.msk.f32.mxu1 %vm229_vm1, %v34_v41 }
  0xf1   :  { %545 = vmatmul.mubr.msk.f32.gmra.mrb[2].mxu1 %vm229_vm1, %v35_v42 }
  0xf2   :  { %547 = vmatprep.mubr.msk.f32.mxu1 %vm229_vm1, %v36_v43 }
  0xf5   :  { %548 = vmatmul.mubr.msk.f32.gmra.mrb[4].mxu1 %vm229_vm1, %v37_v44 }
  0xf6   :  { %550 = vmatprep.mubr.msk.f32.mxu1 %vm229_vm1, %v38_v45 }
  0xf9   :  { %551 = vmatmul.mubr.msk.f32.gmra.mrb[6].mxu1 %vm229_vm1, %v39_v46 }
 0x1c0   :  { %v543_v53 = vpop.f32.mrb[0].mxu1 }
 0x1c1   :  { %v326_v54 = vadd.f32 %v543_v53, %v197_v51  ;;  %v320_v55 = vpop.f32.mrb[1].mxu1 }
 0x1c2   :  { %v321_v56 = vadd.f32 %v320_v55, %v192_v49 }
 0x1c3   :  { %v360_v57 = vmax.f32 %v326_v54, 0.0 }
 0x1c4   :  { %v359_v58 = vmax.f32 %v321_v56, 0.0  ;;  %v546_v59 = vpop.f32.mrb[2].mxu1 }
 0x1c5   :  { %v336_v60 = vadd.f32 %v546_v59, %v207_v52  ;;  %v330_v61 = vpop.f32.mrb[3].mxu1 }
 0x1c6   :  { %v589_v63 = vpack.c.bf16 %v360_v57, %v359_v58  ;;  %v331_v0 = vadd.f32 %v330_v61, %v202_v50 }
 0x1c7   :  { %v362_v2 = vmax.f32 %v336_v60, 0.0 }
 0x1c8   :  { %v361_v3 = vmax.f32 %v331_v0, 0.0  ;;  %v549_v4 = vpop.f32.mrb[4].mxu1  ;;  %590 = vmatpush3.bf16.msra.mxu0 %v589_v63 }
 0x1c9   :  { %v346_v5 = vadd.f32 %v549_v4, %v217_v62  ;;  %v340_v6 = vpop.f32.mrb[5].mxu1  ;;  %591 = vmatprep.subr.bf16.mxu0 %v632_v47 }
 0x1ca   :  { %v592_v7 = vpack.c.bf16 %v362_v2, %v361_v3  ;;  %v341_v8 = vadd.f32 %v340_v6, %v212_v1 }
 0x1cb   :  { %v364_v9 = vmax.f32 %v346_v5, 0.0 }
 0x1cc   :  { %v363_v11 = vmax.f32 %v341_v8, 0.0  ;;  %v552_v12 = vpop.f32.mrb[6].mxu1  ;;  %593 = vmatpush3.bf16.msra.mxu0 %v592_v7 }
 0x1cd   :  { %v356_v14 = vadd.f32 %v552_v12, %v227_v10  ;;  %v350_v15 = vpop.f32.mrb[7].mxu1  ;;  %594 = vmatprep.subr.bf16.mxu0 %v632_v47 }
 0x1ce   :  { %v595_v16 = vpack.c.bf16 %v364_v9, %v363_v11  ;;  %v351_v17 = vadd.f32 %v350_v15, %v222_v13 }
 0x1cf   :  { %v366_v18 = vmax.f32 %v356_v14, 0.0 }
 0x1d0   :  { %v365_v19 = vmax.f32 %v351_v17, 0.0  ;;  %596 = vmatpush3.bf16.msra.mxu0 %v595_v16 }
 0x1d1   :  { %597 = vmatprep.subr.bf16.mxu0 %v632_v47 }
 0x1d2   :  { %v598_v20 = vpack.c.bf16 %v366_v18, %v365_v19 }
 0x1d4   :  { %599 = vmatpush3.bf16.msra.mxu0 %v598_v20 }
 0x1d7   :  { %570 = vmatmul.mubr.msk.f32.vlgmr.msra.gmra.mrb[8].mxu0 %vm229_vm1, %v48_v21 }
 0x2aa   :  { %v441_v23 = vpop.f32.mrb[8].mxu0 }
 0x2ab   :  { %v442_v24 = vadd.f32 %v441_v23, %v370_v22  ;;  %v571_v25 = vpop.f32.mrb[9].mxu0 }
 0x2ad   :  { %445 = vst [vmem:[#allocation2] sm:$0x7] %v442_v24 }
 0x2ae   :  { %618 = shalt.err (!%p615_p4)
}
 0x2af   :  { %s619_s4 = scalar_lea.hbm %s787_s6, 64 }
 0x2b0   :  { %p620_p5 = scmp.ne.s32.totalorder %s787_s6, %s619_s4  ;;  %p623_p6 = scmp.lt.u32.totalorder %s619_s4, %s787_s6 }
 0x2b2   :  { %p625_p7 = pnand %p623_p6, %p620_p5 }
 0x2b4   :  { %628 = shalt.err (!%p625_p7)
}
 0x2b5   :  { %455 = dma.vmem_to_hbm [thread:$0]  %s453_s21, 64, %s787_s6, [#allocation3]  }
 0x2b6   :  { %629 = dma.done.wait [#allocation3], 64  }
 0x2b7   :  { %630 = vsyncadd [#allocation3], 4294967232 }
 0x2b8   :  { %459 = vsyncpa [#allocation3], 1 }

</bundles_post_ra>
